<compile_context>
chip_gen: v7x
topology: tpu7x:2x2x1
jax: 0.10.0
libtpu: 0.0.40
codegen_flags: <defaults>
</compile_context>

<pallas_src>
import math

import jax
import jax.numpy as jnp
from jax.experimental import pallas as pl
from jax.experimental.pallas import tpu as pltpu


def make_positional_encoding(d_model: int, max_len: int = 1024,
                             dtype=jnp.float32) -> jnp.ndarray:
    """Sinusoidal table, identical math to the PyTorch __init__.

    Pass dtype=<model dtype> (e.g. bf16) so the forward pass never casts pe.
    """
    position = jnp.arange(0, max_len, dtype=jnp.float32)[:, None]          # (max_len, 1)
    div_term = jnp.exp(
        jnp.arange(0, d_model, 2, dtype=jnp.float32)
        * (-jnp.log(jnp.float32(10000.0)) / d_model)
    )                                                                      # (d_model//2,)
    pe = jnp.zeros((max_len, d_model), dtype=jnp.float32)
    pe = pe.at[:, 0::2].set(jnp.sin(position * div_term))
    pe = pe.at[:, 1::2].set(jnp.cos(position * div_term))
    return pe[None, :, :].astype(dtype)                                    # (1, max_len, d_model)


def _add_pe_kernel(x_ref, pe_ref, o_ref):
    # x_ref / o_ref: (Bt, TS, Dg).  pe_ref: (1, TS, Dg) -> broadcasts over batch.
    # The (tiny) pe tile is cast on the VPU if its dtype differs from x.
    o_ref[...] = x_ref[...] + pe_ref[...].astype(x_ref.dtype)


def _lane_group(D: int) -> int:
    """Number of consecutive positions to fold into the lane axis so the last
    dim becomes a multiple of 128 (1 if D already is)."""
    if D % 128 == 0:
        return 1
    return 128 // math.gcd(D, 128)


def _choose_tiling(B: int, Sg: int, Dg: int, itemsize: int):
    """Pick (batch_block Bt, seq_block TS).

    VMEM budget ~24 MiB covers double-buffered x-in and out (4*Bt rows worth)
    plus the double-buffered pe tile (2 rows worth):
        (4*Bt + 2) * TS * Dg * itemsize <= BUDGET
    """
    BUDGET = 24 << 20
    min_ts = 16 if itemsize < 4 else 8          # bf16 native tile is (16,128)
    step = min_ts
    base_ts = min(Sg, min_ts)

    # Fold as much of the batch into the block as the budget allows.
    bt = B
    while bt > 1 and (4 * bt + 2) * base_ts * Dg * itemsize > BUDGET:
        bt = (bt + 1) // 2

    # Largest sequence tile that fits the budget.
    cap = max(1, BUDGET // ((4 * bt + 2) * Dg * itemsize))
    if Sg <= cap:
        ts = Sg                                  # whole (regrouped) sequence in one block
        # v7x megacore: if everything collapsed to a single grid step, split
        # the sequence in two so both TensorCores get work.
        if bt == B and Sg >= 2 * min_ts and (Sg // 2) % 8 == 0:
            ts = Sg // 2
    else:
        ts = max(min_ts, min(1024, (cap // step) * step))
        if ts >= Sg:
            ts = Sg
    return bt, ts


def positional_encoding_forward(x: jnp.ndarray, pe: jnp.ndarray,
                                *, donate_x: bool = False) -> jnp.ndarray:
    """x: (B, S, D), pe: (1, max_len, D) -> x + pe[:, :S]  (computed in x.dtype)."""
    B, S, D = x.shape
    assert pe.shape[0] == 1 and pe.shape[2] == D and S <= pe.shape[1]
    max_len = pe.shape[1]

    # Lane-dense regrouping: fold g positions into the lane axis so the last
    # dim is a multiple of 128 (unmasked vst) even when d_model is not.
    # Both reshapes are contiguous / layout-preserving (no HBM pass).
    g = _lane_group(D)
    if g > 1 and (S % g != 0 or max_len % g != 0):
        g = 1                                   # fall back to full-D (masked-store) blocks
    Sg, Dg = S // g, g * D
    x3 = x.reshape(B, Sg, Dg)
    peg = pe.reshape(1, max_len // g, Dg)

    bt, ts = _choose_tiling(B, Sg, Dg, x.dtype.itemsize)

    # pe's block seq dim must be a multiple of 8 or equal pe's full seq dim.
    # ts % 8 != 0 only happens when ts == Sg; slice pe (tiny, prefix-contiguous)
    # in that corner case so the block equals the full axis.
    if ts % 8 != 0 and peg.shape[1] != ts:
        peg = peg[:, :ts, :]

    grid = (pl.cdiv(Sg, ts), pl.cdiv(B, bt))    # sequence OUTER, batch INNER ->
    #                                             pe tile is re-fetched only when the seq tile changes.

    extra = {"input_output_aliases": {0: 0}} if donate_x else {}

    out3 = pl.pallas_call(
        _add_pe_kernel,
        out_shape=jax.ShapeDtypeStruct((B, Sg, Dg), x.dtype),
        grid_spec=pltpu.PrefetchScalarGridSpec(
            num_scalar_prefetch=0,
            grid=grid,
            in_specs=[
                pl.BlockSpec((bt, ts, Dg), lambda s, b: (b, s, 0)),   # x tile (batch folded in)
                pl.BlockSpec((1, ts, Dg), lambda s, b: (0, s, 0)),    # pe tile (batch-invariant)
            ],
            out_specs=pl.BlockSpec((bt, ts, Dg), lambda s, b: (b, s, 0)),
        ),
        compiler_params=pltpu.CompilerParams(
            # "parallel" only pays off on v7x megacore; harmless on v5e/v6e.
            dimension_semantics=("parallel", "parallel"),
            vmem_limit_bytes=32 * 1024 * 1024,  # v5e default scoped limit is 16 MiB
        ),
        **extra,
    )(x3, peg)

    return out3.reshape(B, S, D)


if __name__ == "__main__":
    max_len = 1024
    key = jax.random.PRNGKey(0)
    k1, k2 = jax.random.split(key)

    # 1) module-consistent tiny shape (batch=2, seq=8, d_model=32):
    #    exercises the lane-dense regroup path (fold 4 positions -> 128 lanes).
    B, S, D = 2, 8, 32
    x = jax.random.normal(k1, (B, S, D), dtype=jnp.float32)
    pe = make_positional_encoding(D, max_len)                     # f32 buffer, like PyTorch
    out = jax.block_until_ready(positional_encoding_forward(x, pe))
    ref = x + pe[:, :S]
    assert out.shape == (B, S, D)
    assert jnp.allclose(out, ref, atol=1e-6), "mismatch vs reference (f32)"

    # 2) BERT-like bf16 shape: batch folded into the block, 2 sequence tiles,
    #    pe stored in the model dtype at init (no per-call cast pass).
    B2, S2, D2 = 2, 512, 128
    x2 = jax.random.normal(k2, (B2, S2, D2), dtype=jnp.bfloat16)
    pe2 = make_positional_encoding(D2, max_len, dtype=jnp.bfloat16)
    out2 = jax.block_until_ready(positional_encoding_forward(x2, pe2))
    ref2 = x2 + pe2[:, :S2]
    assert out2.shape == (B2, S2, D2)
    assert jnp.allclose(out2.astype(jnp.float32), ref2.astype(jnp.float32), atol=1e-2), \
        "mismatch vs reference (bf16)"

    print("KERNEL_OK")
</pallas_src>

<mosaic_0001>
module attributes {stable_mosaic.version = 11 : i64} {
  func.func @_add_pe_kernel(%arg0: i32, %arg1: i32, %arg2: memref<2x2x128xf32, #tpu.memory_space<vmem>>, %arg3: memref<1x2x128xf32, #tpu.memory_space<vmem>>, %arg4: memref<2x2x128xf32, #tpu.memory_space<vmem>>) attributes {dimension_semantics = [#tpu.dimension_semantics<parallel>, #tpu.dimension_semantics<parallel>], iteration_bounds = array<i64: 1, 1>, scalar_prefetch = 0 : i64, scratch_operands = 0 : i64, tpu.core_type = #tpu.core_type<tc>, window_params = [{transform_indices = @transform_0, window_bounds = array<i64: 2, 2, 128>}, {transform_indices = @transform_1, window_bounds = array<i64: 1, 2, 128>}, {transform_indices = @transform_2, window_bounds = array<i64: 2, 2, 128>}]} {
    %c0 = arith.constant 0 : index
    %c0_0 = arith.constant 0 : index
    %c0_1 = arith.constant 0 : index
    %0 = vector.load %arg2[%c0, %c0_0, %c0_1] : memref<2x2x128xf32, #tpu.memory_space<vmem>>, vector<2x2x128xf32>
    %c0_2 = arith.constant 0 : index
    %c0_3 = arith.constant 0 : index
    %c0_4 = arith.constant 0 : index
    %1 = vector.load %arg3[%c0_2, %c0_3, %c0_4] : memref<1x2x128xf32, #tpu.memory_space<vmem>>, vector<1x2x128xf32>
    %2 = vector.broadcast %1 : vector<1x2x128xf32> to vector<2x2x128xf32>
    %3 = arith.addf %0, %2 : vector<2x2x128xf32>
    %c0_5 = arith.constant 0 : index
    %c0_6 = arith.constant 0 : index
    %c0_7 = arith.constant 0 : index
    %4 = vector.load %arg4[%c0_5, %c0_6, %c0_7] : memref<2x2x128xf32, #tpu.memory_space<vmem>>, vector<2x2x128xf32>
    tpu.vector_store %arg4[%c0_5, %c0_6, %c0_7], %3 {strides = array<i32>} : memref<2x2x128xf32, #tpu.memory_space<vmem>>, vector<2x2x128xf32>,
    return
  }
  func.func @transform_0(%arg0: i32, %arg1: i32) -> (i32, i32, i32) {
    %c0_i32 = arith.constant 0 : i32
    %c0_i32_0 = arith.constant 0 : i32
    return %arg1, %arg0, %c0_i32 : i32, i32, i32
  }
  func.func @transform_1(%arg0: i32, %arg1: i32) -> (i32, i32, i32) {
    %c0_i32 = arith.constant 0 : i32
    %c0_i32_0 = arith.constant 0 : i32
    %c0_i32_1 = arith.constant 0 : i32
    return %c0_i32, %arg0, %c0_i32_0 : i32, i32, i32
  }
  func.func @transform_2(%arg0: i32, %arg1: i32) -> (i32, i32, i32) {
    %c0_i32 = arith.constant 0 : i32
    %c0_i32_0 = arith.constant 0 : i32
    return %arg1, %arg0, %c0_i32 : i32, i32, i32
  }
}

</mosaic_0001>

<bundles_post_ra>
// kernel: tpu_custom_call.1
= control target key start
LH: loop header
LB: loop body
LE: loop exit
PB: predicated region body
PF: predicated region fallthrough
CT: control target
= control target key end

     0   :  { %7 = vsyncpa [#allocation3], 0  ;;  %s154_s0 = inlined_call_operand.hbm [shape: f32[2,2,128], index: 0, kind: input, shape index: {}]   ;;  %s155_s1 = inlined_call_operand.vmem [shape: f32[1,2,128], index: 1, kind: input, shape index: {}]   ;;  %s156_s2 = inlined_call_operand.hbm [shape: f32[2,2,128], index: 2, kind: output, shape index: {}]  }
   0x1   :  { %8 = vsyncpa [#allocation4], 0  ;;  %s102_s9 = smov [#allocation2]   ;;  %s54_s13 = scalar_lea.hbm %s154_s0, 64 }
   0x2   :  { %s14_s10 = sshll.u32 %s102_s9, 4  ;;  %p55_p0 = scmp.ne.s32.totalorder %s154_s0, %s54_s13  ;;  %s15_s10 = int_to_ptr.vmem [resolvable:$true] %s14_s10 }
   0x3   :  { %p58_p1 = scmp.lt.u32.totalorder %s54_s13, %s154_s0 }
   0x5   :  { %p60_p2 = pnand %p58_p1, %p55_p0 }
   0x7   :  { %63 = shalt.err (!%p60_p2)
}
   0x8   :  { %s64_s18 = scalar_lea.vmem %s15_s10, 64  ;;  %p69_p4 = scmp.lt.s32.totalorder %s15_s10, %s15_s10 }
   0x9   :  { %p65_p3 = scmp.ne.s32.totalorder %s15_s10, %s64_s18  ;;  %p70_p5 = scmp.lt.s32.totalorder %s64_s18, %s64_s18 }
   0xb   :  { %p71_p6 = por %p70_p5, %p69_p4 }
   0xd   :  { %p72_p7 = pnand %p71_p6, %p65_p3 }
   0xf   :  { %75 = shalt.err (!%p72_p7)
}
  0x10   :  { %s103_s19 = smov 32   ;;  %s104_s20 = smov 2  }
  0x11   :  { %20 = dma.hbm_to_vmem [thread:$0]  %s154_s0, 64, %s15_s10, [#allocation3], %s103_s19, %s103_s19, %s104_s20  }
  0x12   :  { %98 = dma.done.wait [#allocation3], 64  }
  0x13   :  { %99 = vsyncadd [#allocation3], 4294967232  ;;  %s105_s23 = smov [#allocation5]   ;;  %v26_v0 = vld [vmem:[#allocation2] sm:$0x3] }
  0x14   :  { %s38_s24 = sshll.u32 %s105_s23, 4  ;;  %v28_v1 = vld [vmem:[%s155_s1] sm:$0x3]  ;;  %v27_v2 = vld [vmem:[#allocation2 + $0x2] sm:$0x3]  ;;  %s39_s24 = int_to_ptr.vmem [resolvable:$true] %s38_s24 }
  0x15   :  { %v29_v3 = vadd.f32 %v28_v1, %v26_v0  ;;  %v30_v4 = vadd.f32 %v28_v1, %v27_v2  ;;  %s76_s27 = scalar_lea.vmem %s39_s24, 64  ;;  %p81_p9 = scmp.lt.s32.totalorder %s39_s24, %s39_s24 }
  0x16   :  { %p77_p8 = scmp.ne.s32.totalorder %s39_s24, %s76_s27  ;;  %p82_p10 = scmp.lt.s32.totalorder %s76_s27, %s76_s27 }
  0x17   :  { %31 = vst [vmem:[#allocation5] sm:$0x3] %v29_v3  ;;  %32 = vst [vmem:[#allocation5 + $0x2] sm:$0x3] %v30_v4 }
  0x18   :  { %p83_p11 = por %p82_p10, %p81_p9 }
  0x1a   :  { %p84_p12 = pnand %p83_p11, %p77_p8 }
  0x1c   :  { %87 = shalt.err (!%p84_p12)
}
  0x1d   :  { %s88_s29 = scalar_lea.hbm %s156_s2, 64 }
  0x1e   :  { %p89_p13 = scmp.ne.s32.totalorder %s156_s2, %s88_s29  ;;  %p92_p0 = scmp.lt.u32.totalorder %s88_s29, %s156_s2 }
  0x20   :  { %p94_p1 = pnand %p92_p0, %p89_p13 }
  0x22   :  { %97 = shalt.err (!%p94_p1)
}
  0x23   :  { %44 = dma.vmem_to_hbm [thread:$0]  %s39_s24, 64, %s156_s2, [#allocation4], %s103_s19, %s103_s19, %s104_s20  }
  0x24   :  { %100 = dma.done.wait [#allocation4], 64  }
  0x25   :  { %101 = vsyncadd [#allocation4], 4294967232 }
  0x26   :  { %48 = vsyncpa [#allocation3], 1 }
  0x27   :  { %49 = vsyncpa [#allocation4], 1 }

</bundles_post_ra>
